<compile_context>
chip_gen: v5e
topology: v5e:2x2
jax: 0.10.0
libtpu: 0.0.40
codegen_flags: <defaults>
</compile_context>

<pallas_src>
import jax
import jax.numpy as jnp
from jax import lax
from jax.experimental import pallas as pl
from jax.experimental.pallas import tpu as pltpu


def rnn_fc_kernel(x_ref, wih0_ref, wihr_ref, whh_ref, b_ref, fcw_ref, fcb_ref,
                  out_ref, seq_ref):
    """Multi-layer Elman RNN (tanh) + final Linear for one batch block.

    x_ref   : (S, BB, Ip)   time-major input block                    (VMEM)
    wih0_ref: (Ip, Hp)      layer-0 input->hidden weight, transposed
    wihr_ref: (L-1, Hp, Hp) layers>=1 input->hidden weights, transposed (placeholder if L==1)
    whh_ref : (L, Hp, Hp)   hidden->hidden weights, transposed
    b_ref   : (L, Hp)       b_ih + b_hh per layer
    fcw_ref : (Hp, Cp)      fc weight, transposed
    fcb_ref : (1, Cp)       fc bias
    out_ref : (BB, Cp)      output block
    seq_ref : (S, BB, Hp)   scratch: pre-activations / current layer's hidden sequence
    """
    S, BB, _ = x_ref.shape
    H = whh_ref.shape[-1]
    L = b_ref.shape[0]

    h_last = jnp.zeros((BB, H), jnp.float32)
    for l in range(L):  # static layer loop (unrolled at trace time)
        # ---- hoisted input->hidden projection: one GEMM for all S timesteps ----
        if l == 0:
            inp = x_ref[...]                     # (S, BB, Ip)
            w_ih = wih0_ref[...]                 # (Ip, Hp)
        else:
            inp = seq_ref[...]                   # (S, BB, Hp)  previous layer's outputs
            w_ih = wihr_ref[l - 1]               # (Hp, Hp)
        d_in = inp.shape[-1]
        pre = jnp.dot(inp.reshape(S * BB, d_in), w_ih,
                      preferred_element_type=jnp.float32)
        pre = pre + b_ref[l:l + 1, :]            # bias folded in once per layer
        seq_ref[...] = pre.reshape(S, BB, H)

        w_hh = whh_ref[l]                        # (Hp, Hp)
        is_last_layer = (l == L - 1)

        # ---- serial recurrence: only h @ W_hh + tanh on the critical path ----
        def step(t, h, w_hh=w_hh, is_last_layer=is_last_layer):
            h_new = jnp.tanh(
                seq_ref[t]
                + jnp.dot(h, w_hh, preferred_element_type=jnp.float32))
            if not is_last_layer:
                seq_ref[t] = h_new               # becomes next layer's input sequence
            return h_new

        h_last = lax.fori_loop(0, S, step, jnp.zeros((BB, H), jnp.float32),
                               unroll=True)

    # out = h_last @ fc_w.T + fc_b   (lane-dense (BB, Cp) store)
    out_ref[...] = (jnp.dot(h_last, fcw_ref[...],
                            preferred_element_type=jnp.float32)
                    + fcb_ref[...])


def _round_up(n, m):
    return ((n + m - 1) // m) * m


def init_params(key, input_size, hidden_size, num_layers, num_classes):
    """Deterministic parameter init (shapes match nn.RNN / nn.Linear)."""
    ks = jax.random.split(key, 4 * num_layers + 2)
    k = 1.0 / jnp.sqrt(hidden_size)
    w_ih, w_hh, b_ih, b_hh = [], [], [], []
    for l in range(num_layers):
        in_sz = input_size if l == 0 else hidden_size
        w_ih.append(jax.random.uniform(ks[4 * l + 0], (hidden_size, in_sz),
                                       jnp.float32, -k, k))
        w_hh.append(jax.random.uniform(ks[4 * l + 1], (hidden_size, hidden_size),
                                       jnp.float32, -k, k))
        b_ih.append(jax.random.uniform(ks[4 * l + 2], (hidden_size,),
                                       jnp.float32, -k, k))
        b_hh.append(jax.random.uniform(ks[4 * l + 3], (hidden_size,),
                                       jnp.float32, -k, k))
    fc_w = jax.random.uniform(ks[-2], (num_classes, hidden_size), jnp.float32, -k, k)
    fc_b = jax.random.uniform(ks[-1], (num_classes,), jnp.float32, -k, k)
    return dict(w_ih=w_ih, w_hh=w_hh, b_ih=b_ih, b_hh=b_hh, fc_w=fc_w, fc_b=fc_b)


def my_rnn_forward(x, params, *, batch_block=None):
    """x: (B, S, I) batch-first, like the PyTorch module."""
    B, S, I = x.shape
    L = len(params["w_hh"])
    H = params["w_hh"][0].shape[0]
    C = params["fc_w"].shape[0]
    f32 = jnp.float32

    # ---- hardware-friendly padded sizes (f32: 8-sublane, 128-lane) ----
    Ip = _round_up(I, 128)
    Hp = _round_up(H, 128)
    Cp = _round_up(C, 128)
    if batch_block is None:
        batch_block = min(_round_up(B, 8), 128)
    BB = _round_up(batch_block, 8)
    Bp = _round_up(max(B, BB), BB)
    n_bblocks = Bp // BB

    # ---- layout glue (plain JAX): time-major input, transposed + zero-padded weights ----
    x_tm = jnp.transpose(x.astype(f32), (1, 0, 2))                       # (S, B, I)
    x_tm = jnp.pad(x_tm, ((0, 0), (0, Bp - B), (0, Ip - I)))             # (S, Bp, Ip)

    wih0_T = jnp.pad(params["w_ih"][0].astype(f32).T,
                     ((0, Ip - I), (0, Hp - H)))                         # (Ip, Hp)
    if L > 1:
        wihr_T = jnp.stack(
            [jnp.pad(w.astype(f32).T, ((0, Hp - H), (0, Hp - H)))
             for w in params["w_ih"][1:]], 0)                            # (L-1, Hp, Hp)
    else:
        wihr_T = jnp.zeros((1, 8, 128), f32)                             # tiny, never read
    whh_T = jnp.stack(
        [jnp.pad(w.astype(f32).T, ((0, Hp - H), (0, Hp - H)))
         for w in params["w_hh"]], 0)                                    # (L, Hp, Hp)
    b_sum = jnp.stack(
        [jnp.pad((bi + bh).astype(f32), (0, Hp - H))
         for bi, bh in zip(params["b_ih"], params["b_hh"])], 0)          # (L, Hp)
    fcw_T = jnp.pad(params["fc_w"].astype(f32).T,
                    ((0, Hp - H), (0, Cp - C)))                          # (Hp, Cp)
    fcb = jnp.pad(params["fc_b"].astype(f32), (0, Cp - C))[None, :]      # (1, Cp)

    # ---- explicit VMEM budget (2x for pipeline buffering + slack), capped for v7x ----
    vmem_bytes = 4 * (S * BB * Ip + wih0_T.size + wihr_T.size + whh_T.size
                      + b_sum.size + fcw_T.size + fcb.size
                      + BB * Cp + S * BB * Hp)
    vmem_limit = int(min(max(2 * vmem_bytes + (1 << 20), 8 << 20), 48 << 20))

    out = pl.pallas_call(
        rnn_fc_kernel,
        out_shape=jax.ShapeDtypeStruct((Bp, Cp), f32),
        grid_spec=pltpu.PrefetchScalarGridSpec(
            num_scalar_prefetch=0,
            grid=(n_bblocks,),
            in_specs=[
                pl.BlockSpec((S, BB, Ip), lambda b: (0, b, 0)),
                pl.BlockSpec(wih0_T.shape, lambda b: (0, 0)),
                pl.BlockSpec(wihr_T.shape, lambda b: (0, 0, 0)),
                pl.BlockSpec(whh_T.shape, lambda b: (0, 0, 0)),
                pl.BlockSpec(b_sum.shape, lambda b: (0, 0)),
                pl.BlockSpec(fcw_T.shape, lambda b: (0, 0)),
                pl.BlockSpec(fcb.shape, lambda b: (0, 0)),
            ],
            out_specs=pl.BlockSpec((BB, Cp), lambda b: (b, 0)),
            scratch_shapes=[pltpu.VMEM((S, BB, Hp), f32)],
        ),
        compiler_params=pltpu.CompilerParams(
            dimension_semantics=("parallel",),
            vmem_limit_bytes=vmem_limit,
        ),
    )(x_tm, wih0_T, wihr_T, whh_T, b_sum, fcw_T, fcb)

    return out[:B, :C]


def my_rnn_reference(x, params):
    """Pure-JAX reference reproducing the PyTorch forward exactly."""
    B, S, I = x.shape
    L = len(params["w_hh"])
    H = params["w_hh"][0].shape[0]
    layer_in = x.astype(jnp.float32)
    for l in range(L):
        h = jnp.zeros((B, H), jnp.float32)
        outs = []
        for t in range(S):
            h = jnp.tanh(layer_in[:, t] @ params["w_ih"][l].T
                         + h @ params["w_hh"][l].T
                         + params["b_ih"][l] + params["b_hh"][l])
            outs.append(h)
        layer_in = jnp.stack(outs, axis=1)
    return layer_in[:, -1, :] @ params["fc_w"].T + params["fc_b"]


if __name__ == "__main__":
    # Small shapes consistent with the module: batch=2, seq=8, input=16,
    # hidden=32, num_layers=2, num_classes=10.
    batch, seq, input_size = 2, 8, 16
    hidden_size, num_layers, num_classes = 32, 2, 10

    key = jax.random.PRNGKey(0)
    kx, kp = jax.random.split(key)
    x = jax.random.normal(kx, (batch, seq, input_size), jnp.float32)
    params = init_params(kp, input_size, hidden_size, num_layers, num_classes)

    out = my_rnn_forward(x, params)
    jax.block_until_ready(out)

    ref = my_rnn_reference(x, params)
    assert out.shape == (batch, num_classes)
    assert jnp.allclose(out, ref, atol=1e-4, rtol=1e-4), "mismatch vs reference"

    print("KERNEL_OK")
</pallas_src>

<mosaic_0001>
module attributes {stable_mosaic.version = 11 : i64} {
  func.func @rnn_fc_kernel(%arg0: i32, %arg1: memref<8x8x128xf32, #tpu.memory_space<vmem>>, %arg2: memref<128x128xf32, #tpu.memory_space<vmem>>, %arg3: memref<1x128x128xf32, #tpu.memory_space<vmem>>, %arg4: memref<2x128x128xf32, #tpu.memory_space<vmem>>, %arg5: memref<2x128xf32, #tpu.memory_space<vmem>>, %arg6: memref<128x128xf32, #tpu.memory_space<vmem>>, %arg7: memref<1x128xf32, #tpu.memory_space<vmem>>, %arg8: memref<8x128xf32, #tpu.memory_space<vmem>>, %arg9: memref<8x8x128xf32, #tpu.memory_space<vmem>>) attributes {dimension_semantics = [#tpu.dimension_semantics<parallel>], iteration_bounds = array<i64: 1>, scalar_prefetch = 0 : i64, scratch_operands = 1 : i64, tpu.core_type = #tpu.core_type<tc>, window_params = [{transform_indices = @transform_0, window_bounds = array<i64: 8, 8, 128>}, {pipeline_mode = #tpu.pipeline_mode<synchronous>, transform_indices = @transform_1, window_bounds = array<i64: 128, 128>}, {pipeline_mode = #tpu.pipeline_mode<synchronous>, transform_indices = @transform_2, window_bounds = array<i64: 1, 128, 128>}, {pipeline_mode = #tpu.pipeline_mode<synchronous>, transform_indices = @transform_3, window_bounds = array<i64: 2, 128, 128>}, {pipeline_mode = #tpu.pipeline_mode<synchronous>, transform_indices = @transform_4, window_bounds = array<i64: 2, 128>}, {pipeline_mode = #tpu.pipeline_mode<synchronous>, transform_indices = @transform_5, window_bounds = array<i64: 128, 128>}, {pipeline_mode = #tpu.pipeline_mode<synchronous>, transform_indices = @transform_6, window_bounds = array<i64: 1, 128>}, {transform_indices = @transform_7, window_bounds = array<i64: 8, 128>}]} {
    %c0 = arith.constant 0 : index
    %c0_0 = arith.constant 0 : index
    %c0_1 = arith.constant 0 : index
    %0 = vector.load %arg1[%c0, %c0_0, %c0_1] : memref<8x8x128xf32, #tpu.memory_space<vmem>>, vector<8x8x128xf32>
    %c0_2 = arith.constant 0 : index
    %c0_3 = arith.constant 0 : index
    %1 = vector.load %arg2[%c0_2, %c0_3] : memref<128x128xf32, #tpu.memory_space<vmem>>, vector<128x128xf32>
    %2 = vector.shape_cast %0 : vector<8x8x128xf32> to vector<64x128xf32>
    %cst = arith.constant dense<0.000000e+00> : vector<64x128xf32>
    %3 = tpu.matmul %2, %1, %cst {dimension_numbers = #tpu.dot_dimension_numbers<[1], [0], [0], [1], [0, 0, 1, 1], [], []>} : vector<64x128xf32>, vector<128x128xf32>, vector<64x128xf32> -> vector<64x128xf32>
    %c0_4 = arith.constant 0 : index
    %c0_5 = arith.constant 0 : index
    %4 = vector.load %arg5[%c0_4, %c0_5] : memref<2x128xf32, #tpu.memory_space<vmem>>, vector<1x128xf32>
    %5 = vector.broadcast %4 : vector<1x128xf32> to vector<64x128xf32>
    %6 = arith.addf %3, %5 : vector<64x128xf32>
    %7 = vector.shape_cast %6 : vector<64x128xf32> to vector<8x8x128xf32>
    %c0_6 = arith.constant 0 : index
    %c0_7 = arith.constant 0 : index
    %c0_8 = arith.constant 0 : index
    %8 = vector.load %arg9[%c0_6, %c0_7, %c0_8] : memref<8x8x128xf32, #tpu.memory_space<vmem>>, vector<8x8x128xf32>
    tpu.vector_store %arg9[%c0_6, %c0_7, %c0_8], %7 {strides = array<i32>} : memref<8x8x128xf32, #tpu.memory_space<vmem>>, vector<8x8x128xf32>,
    %c0_9 = arith.constant 0 : index
    %c0_10 = arith.constant 0 : index
    %c0_11 = arith.constant 0 : index
    %9 = vector.load %arg4[%c0_9, %c0_10, %c0_11] : memref<2x128x128xf32, #tpu.memory_space<vmem>>, vector<1x128x128xf32>
    %10 = vector.shape_cast %9 : vector<1x128x128xf32> to vector<128x128xf32>
    %cst_12 = arith.constant 0.000000e+00 : f32
    %11 = vector.broadcast %cst_12 : f32 to vector<8x128xf32>
    %c0_i32 = arith.constant 0 : i32
    %12 = arith.index_cast %c0_i32 : i32 to index
    %c0_13 = arith.constant 0 : index
    %c0_14 = arith.constant 0 : index
    %13 = vector.load %arg9[%12, %c0_13, %c0_14] : memref<8x8x128xf32, #tpu.memory_space<vmem>>, vector<1x8x128xf32>
    %14 = vector.shape_cast %13 : vector<1x8x128xf32> to vector<8x128xf32>
    %cst_15 = arith.constant dense<0.000000e+00> : vector<8x128xf32>
    %15 = tpu.matmul %11, %10, %cst_15 {dimension_numbers = #tpu.dot_dimension_numbers<[1], [0], [0], [1], [0, 0, 1, 1], [], []>} : vector<8x128xf32>, vector<128x128xf32>, vector<8x128xf32> -> vector<8x128xf32>
    %16 = arith.addf %14, %15 : vector<8x128xf32>
    %17 = math.tanh %16 : vector<8x128xf32>
    %18 = arith.index_cast %c0_i32 : i32 to index
    %c0_16 = arith.constant 0 : index
    %c0_17 = arith.constant 0 : index
    %19 = vector.load %arg9[%18, %c0_16, %c0_17] : memref<8x8x128xf32, #tpu.memory_space<vmem>>, vector<1x8x128xf32>
    %20 = vector.shape_cast %19 : vector<1x8x128xf32> to vector<8x128xf32>
    %21 = vector.shape_cast %17 : vector<8x128xf32> to vector<1x8x128xf32>
    tpu.vector_store %arg9[%18, %c0_16, %c0_17], %21 {strides = array<i32>} : memref<8x8x128xf32, #tpu.memory_space<vmem>>, vector<1x8x128xf32>,
    %c1_i32 = arith.constant 1 : i32
    %22 = arith.index_cast %c1_i32 : i32 to index
    %c0_18 = arith.constant 0 : index
    %c0_19 = arith.constant 0 : index
    %23 = vector.load %arg9[%22, %c0_18, %c0_19] : memref<8x8x128xf32, #tpu.memory_space<vmem>>, vector<1x8x128xf32>
    %24 = vector.shape_cast %23 : vector<1x8x128xf32> to vector<8x128xf32>
    %cst_20 = arith.constant dense<0.000000e+00> : vector<8x128xf32>
    %25 = tpu.matmul %17, %10, %cst_20 {dimension_numbers = #tpu.dot_dimension_numbers<[1], [0], [0], [1], [0, 0, 1, 1], [], []>} : vector<8x128xf32>, vector<128x128xf32>, vector<8x128xf32> -> vector<8x128xf32>
    %26 = arith.addf %24, %25 : vector<8x128xf32>
    %27 = math.tanh %26 : vector<8x128xf32>
    %28 = arith.index_cast %c1_i32 : i32 to index
    %c0_21 = arith.constant 0 : index
    %c0_22 = arith.constant 0 : index
    %29 = vector.load %arg9[%28, %c0_21, %c0_22] : memref<8x8x128xf32, #tpu.memory_space<vmem>>, vector<1x8x128xf32>
    %30 = vector.shape_cast %29 : vector<1x8x128xf32> to vector<8x128xf32>
    %31 = vector.shape_cast %27 : vector<8x128xf32> to vector<1x8x128xf32>
    tpu.vector_store %arg9[%28, %c0_21, %c0_22], %31 {strides = array<i32>} : memref<8x8x128xf32, #tpu.memory_space<vmem>>, vector<1x8x128xf32>,
    %c2_i32 = arith.constant 2 : i32
    %32 = arith.index_cast %c2_i32 : i32 to index
    %c0_23 = arith.constant 0 : index
    %c0_24 = arith.constant 0 : index
    %33 = vector.load %arg9[%32, %c0_23, %c0_24] : memref<8x8x128xf32, #tpu.memory_space<vmem>>, vector<1x8x128xf32>
    %34 = vector.shape_cast %33 : vector<1x8x128xf32> to vector<8x128xf32>
    %cst_25 = arith.constant dense<0.000000e+00> : vector<8x128xf32>
    %35 = tpu.matmul %27, %10, %cst_25 {dimension_numbers = #tpu.dot_dimension_numbers<[1], [0], [0], [1], [0, 0, 1, 1], [], []>} : vector<8x128xf32>, vector<128x128xf32>, vector<8x128xf32> -> vector<8x128xf32>
    %36 = arith.addf %34, %35 : vector<8x128xf32>
    %37 = math.tanh %36 : vector<8x128xf32>
    %38 = arith.index_cast %c2_i32 : i32 to index
    %c0_26 = arith.constant 0 : index
    %c0_27 = arith.constant 0 : index
    %39 = vector.load %arg9[%38, %c0_26, %c0_27] : memref<8x8x128xf32, #tpu.memory_space<vmem>>, vector<1x8x128xf32>
    %40 = vector.shape_cast %39 : vector<1x8x128xf32> to vector<8x128xf32>
    %41 = vector.shape_cast %37 : vector<8x128xf32> to vector<1x8x128xf32>
    tpu.vector_store %arg9[%38, %c0_26, %c0_27], %41 {strides = array<i32>} : memref<8x8x128xf32, #tpu.memory_space<vmem>>, vector<1x8x128xf32>,
    %c3_i32 = arith.constant 3 : i32
    %42 = arith.index_cast %c3_i32 : i32 to index
    %c0_28 = arith.constant 0 : index
    %c0_29 = arith.constant 0 : index
    %43 = vector.load %arg9[%42, %c0_28, %c0_29] : memref<8x8x128xf32, #tpu.memory_space<vmem>>, vector<1x8x128xf32>
    %44 = vector.shape_cast %43 : vector<1x8x128xf32> to vector<8x128xf32>
    %cst_30 = arith.constant dense<0.000000e+00> : vector<8x128xf32>
    %45 = tpu.matmul %37, %10, %cst_30 {dimension_numbers = #tpu.dot_dimension_numbers<[1], [0], [0], [1], [0, 0, 1, 1], [], []>} : vector<8x128xf32>, vector<128x128xf32>, vector<8x128xf32> -> vector<8x128xf32>
    %46 = arith.addf %44, %45 : vector<8x128xf32>
    %47 = math.tanh %46 : vector<8x128xf32>
    %48 = arith.index_cast %c3_i32 : i32 to index
    %c0_31 = arith.constant 0 : index
    %c0_32 = arith.constant 0 : index
    %49 = vector.load %arg9[%48, %c0_31, %c0_32] : memref<8x8x128xf32, #tpu.memory_space<vmem>>, vector<1x8x128xf32>
    %50 = vector.shape_cast %49 : vector<1x8x128xf32> to vector<8x128xf32>
    %51 = vector.shape_cast %47 : vector<8x128xf32> to vector<1x8x128xf32>
    tpu.vector_store %arg9[%48, %c0_31, %c0_32], %51 {strides = array<i32>} : memref<8x8x128xf32, #tpu.memory_space<vmem>>, vector<1x8x128xf32>,
    %c4_i32 = arith.constant 4 : i32
    %52 = arith.index_cast %c4_i32 : i32 to index
    %c0_33 = arith.constant 0 : index
    %c0_34 = arith.constant 0 : index
    %53 = vector.load %arg9[%52, %c0_33, %c0_34] : memref<8x8x128xf32, #tpu.memory_space<vmem>>, vector<1x8x128xf32>
    %54 = vector.shape_cast %53 : vector<1x8x128xf32> to vector<8x128xf32>
    %cst_35 = arith.constant dense<0.000000e+00> : vector<8x128xf32>
    %55 = tpu.matmul %47, %10, %cst_35 {dimension_numbers = #tpu.dot_dimension_numbers<[1], [0], [0], [1], [0, 0, 1, 1], [], []>} : vector<8x128xf32>, vector<128x128xf32>, vector<8x128xf32> -> vector<8x128xf32>
    %56 = arith.addf %54, %55 : vector<8x128xf32>
    %57 = math.tanh %56 : vector<8x128xf32>
    %58 = arith.index_cast %c4_i32 : i32 to index
    %c0_36 = arith.constant 0 : index
    %c0_37 = arith.constant 0 : index
    %59 = vector.load %arg9[%58, %c0_36, %c0_37] : memref<8x8x128xf32, #tpu.memory_space<vmem>>, vector<1x8x128xf32>
    %60 = vector.shape_cast %59 : vector<1x8x128xf32> to vector<8x128xf32>
    %61 = vector.shape_cast %57 : vector<8x128xf32> to vector<1x8x128xf32>
    tpu.vector_store %arg9[%58, %c0_36, %c0_37], %61 {strides = array<i32>} : memref<8x8x128xf32, #tpu.memory_space<vmem>>, vector<1x8x128xf32>,
    %c5_i32 = arith.constant 5 : i32
    %62 = arith.index_cast %c5_i32 : i32 to index
    %c0_38 = arith.constant 0 : index
    %c0_39 = arith.constant 0 : index
    %63 = vector.load %arg9[%62, %c0_38, %c0_39] : memref<8x8x128xf32, #tpu.memory_space<vmem>>, vector<1x8x128xf32>
    %64 = vector.shape_cast %63 : vector<1x8x128xf32> to vector<8x128xf32>
    %cst_40 = arith.constant dense<0.000000e+00> : vector<8x128xf32>
    %65 = tpu.matmul %57, %10, %cst_40 {dimension_numbers = #tpu.dot_dimension_numbers<[1], [0], [0], [1], [0, 0, 1, 1], [], []>} : vector<8x128xf32>, vector<128x128xf32>, vector<8x128xf32> -> vector<8x128xf32>
    %66 = arith.addf %64, %65 : vector<8x128xf32>
    %67 = math.tanh %66 : vector<8x128xf32>
    %68 = arith.index_cast %c5_i32 : i32 to index
    %c0_41 = arith.constant 0 : index
    %c0_42 = arith.constant 0 : index
    %69 = vector.load %arg9[%68, %c0_41, %c0_42] : memref<8x8x128xf32, #tpu.memory_space<vmem>>, vector<1x8x128xf32>
    %70 = vector.shape_cast %69 : vector<1x8x128xf32> to vector<8x128xf32>
    %71 = vector.shape_cast %67 : vector<8x128xf32> to vector<1x8x128xf32>
    tpu.vector_store %arg9[%68, %c0_41, %c0_42], %71 {strides = array<i32>} : memref<8x8x128xf32, #tpu.memory_space<vmem>>, vector<1x8x128xf32>,
    %c6_i32 = arith.constant 6 : i32
    %72 = arith.index_cast %c6_i32 : i32 to index
    %c0_43 = arith.constant 0 : index
    %c0_44 = arith.constant 0 : index
    %73 = vector.load %arg9[%72, %c0_43, %c0_44] : memref<8x8x128xf32, #tpu.memory_space<vmem>>, vector<1x8x128xf32>
    %74 = vector.shape_cast %73 : vector<1x8x128xf32> to vector<8x128xf32>
    %cst_45 = arith.constant dense<0.000000e+00> : vector<8x128xf32>
    %75 = tpu.matmul %67, %10, %cst_45 {dimension_numbers = #tpu.dot_dimension_numbers<[1], [0], [0], [1], [0, 0, 1, 1], [], []>} : vector<8x128xf32>, vector<128x128xf32>, vector<8x128xf32> -> vector<8x128xf32>
    %76 = arith.addf %74, %75 : vector<8x128xf32>
    %77 = math.tanh %76 : vector<8x128xf32>
    %78 = arith.index_cast %c6_i32 : i32 to index
    %c0_46 = arith.constant 0 : index
    %c0_47 = arith.constant 0 : index
    %79 = vector.load %arg9[%78, %c0_46, %c0_47] : memref<8x8x128xf32, #tpu.memory_space<vmem>>, vector<1x8x128xf32>
    %80 = vector.shape_cast %79 : vector<1x8x128xf32> to vector<8x128xf32>
    %81 = vector.shape_cast %77 : vector<8x128xf32> to vector<1x8x128xf32>
    tpu.vector_store %arg9[%78, %c0_46, %c0_47], %81 {strides = array<i32>} : memref<8x8x128xf32, #tpu.memory_space<vmem>>, vector<1x8x128xf32>,
    %c7_i32 = arith.constant 7 : i32
    %82 = arith.index_cast %c7_i32 : i32 to index
    %c0_48 = arith.constant 0 : index
    %c0_49 = arith.constant 0 : index
    %83 = vector.load %arg9[%82, %c0_48, %c0_49] : memref<8x8x128xf32, #tpu.memory_space<vmem>>, vector<1x8x128xf32>
    %84 = vector.shape_cast %83 : vector<1x8x128xf32> to vector<8x128xf32>
    %cst_50 = arith.constant dense<0.000000e+00> : vector<8x128xf32>
    %85 = tpu.matmul %77, %10, %cst_50 {dimension_numbers = #tpu.dot_dimension_numbers<[1], [0], [0], [1], [0, 0, 1, 1], [], []>} : vector<8x128xf32>, vector<128x128xf32>, vector<8x128xf32> -> vector<8x128xf32>
    %86 = arith.addf %84, %85 : vector<8x128xf32>
    %87 = math.tanh %86 : vector<8x128xf32>
    %88 = arith.index_cast %c7_i32 : i32 to index
    %c0_51 = arith.constant 0 : index
    %c0_52 = arith.constant 0 : index
    %89 = vector.load %arg9[%88, %c0_51, %c0_52] : memref<8x8x128xf32, #tpu.memory_space<vmem>>, vector<1x8x128xf32>
    %90 = vector.shape_cast %89 : vector<1x8x128xf32> to vector<8x128xf32>
    %91 = vector.shape_cast %87 : vector<8x128xf32> to vector<1x8x128xf32>
    tpu.vector_store %arg9[%88, %c0_51, %c0_52], %91 {strides = array<i32>} : memref<8x8x128xf32, #tpu.memory_space<vmem>>, vector<1x8x128xf32>,
    %c8_i32 = arith.constant 8 : i32
    %c0_53 = arith.constant 0 : index
    %c0_54 = arith.constant 0 : index
    %c0_55 = arith.constant 0 : index
    %92 = vector.load %arg9[%c0_53, %c0_54, %c0_55] : memref<8x8x128xf32, #tpu.memory_space<vmem>>, vector<8x8x128xf32>
    %c0_56 = arith.constant 0 : index
    %c0_57 = arith.constant 0 : index
    %c0_58 = arith.constant 0 : index
    %93 = vector.load %arg3[%c0_56, %c0_57, %c0_58] : memref<1x128x128xf32, #tpu.memory_space<vmem>>, vector<1x128x128xf32>
    %94 = vector.shape_cast %93 : vector<1x128x128xf32> to vector<128x128xf32>
    %95 = vector.shape_cast %92 : vector<8x8x128xf32> to vector<64x128xf32>
    %cst_59 = arith.constant dense<0.000000e+00> : vector<64x128xf32>
    %96 = tpu.matmul %95, %94, %cst_59 {dimension_numbers = #tpu.dot_dimension_numbers<[1], [0], [0], [1], [0, 0, 1, 1], [], []>} : vector<64x128xf32>, vector<128x128xf32>, vector<64x128xf32> -> vector<64x128xf32>
    %c1 = arith.constant 1 : index
    %c0_60 = arith.constant 0 : index
    %97 = vector.load %arg5[%c1, %c0_60] : memref<2x128xf32, #tpu.memory_space<vmem>>, vector<1x128xf32>
    %98 = vector.broadcast %97 : vector<1x128xf32> to vector<64x128xf32>
    %99 = arith.addf %96, %98 : vector<64x128xf32>
    %100 = vector.shape_cast %99 : vector<64x128xf32> to vector<8x8x128xf32>
    %c0_61 = arith.constant 0 : index
    %c0_62 = arith.constant 0 : index
    %c0_63 = arith.constant 0 : index
    %101 = vector.load %arg9[%c0_61, %c0_62, %c0_63] : memref<8x8x128xf32, #tpu.memory_space<vmem>>, vector<8x8x128xf32>
    tpu.vector_store %arg9[%c0_61, %c0_62, %c0_63], %100 {strides = array<i32>} : memref<8x8x128xf32, #tpu.memory_space<vmem>>, vector<8x8x128xf32>,
    %c1_64 = arith.constant 1 : index
    %c0_65 = arith.constant 0 : index
    %c0_66 = arith.constant 0 : index
    %102 = vector.load %arg4[%c1_64, %c0_65, %c0_66] : memref<2x128x128xf32, #tpu.memory_space<vmem>>, vector<1x128x128xf32>
    %103 = vector.shape_cast %102 : vector<1x128x128xf32> to vector<128x128xf32>
    %cst_67 = arith.constant 0.000000e+00 : f32
    %104 = vector.broadcast %cst_67 : f32 to vector<8x128xf32>
    %c0_i32_68 = arith.constant 0 : i32
    %105 = arith.index_cast %c0_i32_68 : i32 to index
    %c0_69 = arith.constant 0 : index
    %c0_70 = arith.constant 0 : index
    %106 = vector.load %arg9[%105, %c0_69, %c0_70] : memref<8x8x128xf32, #tpu.memory_space<vmem>>, vector<1x8x128xf32>
    %107 = vector.shape_cast %106 : vector<1x8x128xf32> to vector<8x128xf32>
    %cst_71 = arith.constant dense<0.000000e+00> : vector<8x128xf32>
    %108 = tpu.matmul %104, %103, %cst_71 {dimension_numbers = #tpu.dot_dimension_numbers<[1], [0], [0], [1], [0, 0, 1, 1], [], []>} : vector<8x128xf32>, vector<128x128xf32>, vector<8x128xf32> -> vector<8x128xf32>
    %109 = arith.addf %107, %108 : vector<8x128xf32>
    %110 = math.tanh %109 : vector<8x128xf32>
    %c1_i32_72 = arith.constant 1 : i32
    %111 = arith.index_cast %c1_i32_72 : i32 to index
    %c0_73 = arith.constant 0 : index
    %c0_74 = arith.constant 0 : index
    %112 = vector.load %arg9[%111, %c0_73, %c0_74] : memref<8x8x128xf32, #tpu.memory_space<vmem>>, vector<1x8x128xf32>
    %113 = vector.shape_cast %112 : vector<1x8x128xf32> to vector<8x128xf32>
    %cst_75 = arith.constant dense<0.000000e+00> : vector<8x128xf32>
    %114 = tpu.matmul %110, %103, %cst_75 {dimension_numbers = #tpu.dot_dimension_numbers<[1], [0], [0], [1], [0, 0, 1, 1], [], []>} : vector<8x128xf32>, vector<128x128xf32>, vector<8x128xf32> -> vector<8x128xf32>
    %115 = arith.addf %113, %114 : vector<8x128xf32>
    %116 = math.tanh %115 : vector<8x128xf32>
    %c2_i32_76 = arith.constant 2 : i32
    %117 = arith.index_cast %c2_i32_76 : i32 to index
    %c0_77 = arith.constant 0 : index
    %c0_78 = arith.constant 0 : index
    %118 = vector.load %arg9[%117, %c0_77, %c0_78] : memref<8x8x128xf32, #tpu.memory_space<vmem>>, vector<1x8x128xf32>
    %119 = vector.shape_cast %118 : vector<1x8x128xf32> to vector<8x128xf32>
    %cst_79 = arith.constant dense<0.000000e+00> : vector<8x128xf32>
    %120 = tpu.matmul %116, %103, %cst_79 {dimension_numbers = #tpu.dot_dimension_numbers<[1], [0], [0], [1], [0, 0, 1, 1], [], []>} : vector<8x128xf32>, vector<128x128xf32>, vector<8x128xf32> -> vector<8x128xf32>
    %121 = arith.addf %119, %120 : vector<8x128xf32>
    %122 = math.tanh %121 : vector<8x128xf32>
    %c3_i32_80 = arith.constant 3 : i32
    %123 = arith.index_cast %c3_i32_80 : i32 to index
    %c0_81 = arith.constant 0 : index
    %c0_82 = arith.constant 0 : index
    %124 = vector.load %arg9[%123, %c0_81, %c0_82] : memref<8x8x128xf32, #tpu.memory_space<vmem>>, vector<1x8x128xf32>
    %125 = vector.shape_cast %124 : vector<1x8x128xf32> to vector<8x128xf32>
    %cst_83 = arith.constant dense<0.000000e+00> : vector<8x128xf32>
    %126 = tpu.matmul %122, %103, %cst_83 {dimension_numbers = #tpu.dot_dimension_numbers<[1], [0], [0], [1], [0, 0, 1, 1], [], []>} : vector<8x128xf32>, vector<128x128xf32>, vector<8x128xf32> -> vector<8x128xf32>
    %127 = arith.addf %125, %126 : vector<8x128xf32>
    %128 = math.tanh %127 : vector<8x128xf32>
    %c4_i32_84 = arith.constant 4 : i32
    %129 = arith.index_cast %c4_i32_84 : i32 to index
    %c0_85 = arith.constant 0 : index
    %c0_86 = arith.constant 0 : index
    %130 = vector.load %arg9[%129, %c0_85, %c0_86] : memref<8x8x128xf32, #tpu.memory_space<vmem>>, vector<1x8x128xf32>
    %131 = vector.shape_cast %130 : vector<1x8x128xf32> to vector<8x128xf32>
    %cst_87 = arith.constant dense<0.000000e+00> : vector<8x128xf32>
    %132 = tpu.matmul %128, %103, %cst_87 {dimension_numbers = #tpu.dot_dimension_numbers<[1], [0], [0], [1], [0, 0, 1, 1], [], []>} : vector<8x128xf32>, vector<128x128xf32>, vector<8x128xf32> -> vector<8x128xf32>
    %133 = arith.addf %131, %132 : vector<8x128xf32>
    %134 = math.tanh %133 : vector<8x128xf32>
    %c5_i32_88 = arith.constant 5 : i32
    %135 = arith.index_cast %c5_i32_88 : i32 to index
    %c0_89 = arith.constant 0 : index
    %c0_90 = arith.constant 0 : index
    %136 = vector.load %arg9[%135, %c0_89, %c0_90] : memref<8x8x128xf32, #tpu.memory_space<vmem>>, vector<1x8x128xf32>
    %137 = vector.shape_cast %136 : vector<1x8x128xf32> to vector<8x128xf32>
    %cst_91 = arith.constant dense<0.000000e+00> : vector<8x128xf32>
    %138 = tpu.matmul %134, %103, %cst_91 {dimension_numbers = #tpu.dot_dimension_numbers<[1], [0], [0], [1], [0, 0, 1, 1], [], []>} : vector<8x128xf32>, vector<128x128xf32>, vector<8x128xf32> -> vector<8x128xf32>
    %139 = arith.addf %137, %138 : vector<8x128xf32>
    %140 = math.tanh %139 : vector<8x128xf32>
    %c6_i32_92 = arith.constant 6 : i32
    %141 = arith.index_cast %c6_i32_92 : i32 to index
    %c0_93 = arith.constant 0 : index
    %c0_94 = arith.constant 0 : index
    %142 = vector.load %arg9[%141, %c0_93, %c0_94] : memref<8x8x128xf32, #tpu.memory_space<vmem>>, vector<1x8x128xf32>
    %143 = vector.shape_cast %142 : vector<1x8x128xf32> to vector<8x128xf32>
    %cst_95 = arith.constant dense<0.000000e+00> : vector<8x128xf32>
    %144 = tpu.matmul %140, %103, %cst_95 {dimension_numbers = #tpu.dot_dimension_numbers<[1], [0], [0], [1], [0, 0, 1, 1], [], []>} : vector<8x128xf32>, vector<128x128xf32>, vector<8x128xf32> -> vector<8x128xf32>
    %145 = arith.addf %143, %144 : vector<8x128xf32>
    %146 = math.tanh %145 : vector<8x128xf32>
    %c7_i32_96 = arith.constant 7 : i32
    %147 = arith.index_cast %c7_i32_96 : i32 to index
    %c0_97 = arith.constant 0 : index
    %c0_98 = arith.constant 0 : index
    %148 = vector.load %arg9[%147, %c0_97, %c0_98] : memref<8x8x128xf32, #tpu.memory_space<vmem>>, vector<1x8x128xf32>
    %149 = vector.shape_cast %148 : vector<1x8x128xf32> to vector<8x128xf32>
    %cst_99 = arith.constant dense<0.000000e+00> : vector<8x128xf32>
    %150 = tpu.matmul %146, %103, %cst_99 {dimension_numbers = #tpu.dot_dimension_numbers<[1], [0], [0], [1], [0, 0, 1, 1], [], []>} : vector<8x128xf32>, vector<128x128xf32>, vector<8x128xf32> -> vector<8x128xf32>
    %151 = arith.addf %149, %150 : vector<8x128xf32>
    %152 = math.tanh %151 : vector<8x128xf32>
    %c8_i32_100 = arith.constant 8 : i32
    %c0_101 = arith.constant 0 : index
    %c0_102 = arith.constant 0 : index
    %153 = vector.load %arg6[%c0_101, %c0_102] : memref<128x128xf32, #tpu.memory_space<vmem>>, vector<128x128xf32>
    %cst_103 = arith.constant dense<0.000000e+00> : vector<8x128xf32>
    %154 = tpu.matmul %152, %153, %cst_103 {dimension_numbers = #tpu.dot_dimension_numbers<[1], [0], [0], [1], [0, 0, 1, 1], [], []>} : vector<8x128xf32>, vector<128x128xf32>, vector<8x128xf32> -> vector<8x128xf32>
    %c0_104 = arith.constant 0 : index
    %c0_105 = arith.constant 0 : index
    %155 = vector.load %arg7[%c0_104, %c0_105] : memref<1x128xf32, #tpu.memory_space<vmem>>, vector<1x128xf32>
    %156 = vector.broadcast %155 : vector<1x128xf32> to vector<8x128xf32>
    %157 = arith.addf %154, %156 : vector<8x128xf32>
    %c0_106 = arith.constant 0 : index
    %c0_107 = arith.constant 0 : index
    %158 = vector.load %arg8[%c0_106, %c0_107] : memref<8x128xf32, #tpu.memory_space<vmem>>, vector<8x128xf32>
    tpu.vector_store %arg8[%c0_106, %c0_107], %157 {strides = array<i32>} : memref<8x128xf32, #tpu.memory_space<vmem>>, vector<8x128xf32>,
    return
  }
  func.func @transform_0(%arg0: i32) -> (i32, i32, i32) {
    %c0_i32 = arith.constant 0 : i32
    %c0_i32_0 = arith.constant 0 : i32
    %c0_i32_1 = arith.constant 0 : i32
    return %c0_i32, %arg0, %c0_i32_0 : i32, i32, i32
  }
  func.func @transform_1(%arg0: i32) -> (i32, i32) {
    %c0_i32 = arith.constant 0 : i32
    %c0_i32_0 = arith.constant 0 : i32
    %c0_i32_1 = arith.constant 0 : i32
    return %c0_i32, %c0_i32_0 : i32, i32
  }
  func.func @transform_2(%arg0: i32) -> (i32, i32, i32) {
    %c0_i32 = arith.constant 0 : i32
    %c0_i32_0 = arith.constant 0 : i32
    %c0_i32_1 = arith.constant 0 : i32
    %c0_i32_2 = arith.constant 0 : i32
    return %c0_i32, %c0_i32_0, %c0_i32_1 : i32, i32, i32
  }
  func.func @transform_3(%arg0: i32) -> (i32, i32, i32) {
    %c0_i32 = arith.constant 0 : i32
    %c0_i32_0 = arith.constant 0 : i32
    %c0_i32_1 = arith.constant 0 : i32
    %c0_i32_2 = arith.constant 0 : i32
    return %c0_i32, %c0_i32_0, %c0_i32_1 : i32, i32, i32
  }
  func.func @transform_4(%arg0: i32) -> (i32, i32) {
    %c0_i32 = arith.constant 0 : i32
    %c0_i32_0 = arith.constant 0 : i32
    %c0_i32_1 = arith.constant 0 : i32
    return %c0_i32, %c0_i32_0 : i32, i32
  }
  func.func @transform_5(%arg0: i32) -> (i32, i32) {
    %c0_i32 = arith.constant 0 : i32
    %c0_i32_0 = arith.constant 0 : i32
    %c0_i32_1 = arith.constant 0 : i32
    return %c0_i32, %c0_i32_0 : i32, i32
  }
  func.func @transform_6(%arg0: i32) -> (i32, i32) {
    %c0_i32 = arith.constant 0 : i32
    %c0_i32_0 = arith.constant 0 : i32
    %c0_i32_1 = arith.constant 0 : i32
    return %c0_i32, %c0_i32_0 : i32, i32
  }
  func.func @transform_7(%arg0: i32) -> (i32, i32) {
    %c0_i32 = arith.constant 0 : i32
    %c0_i32_0 = arith.constant 0 : i32
    return %arg0, %c0_i32 : i32, i32
  }
}

</mosaic_0001>

<bundles_post_ra>
// kernel: tpu_custom_call.1
= control target key start
LH: loop header
LB: loop body
LE: loop exit
PB: predicated region body
PF: predicated region fallthrough
CT: control target
= control target key end

     0   :  { %12 = vsyncpa [#allocation4], 0  ;;  %s1353_s0 = inlined_call_operand.hbm [shape: f32[8,8,128], index: 0, kind: input, shape index: {}]   ;;  %s1354_s1 = inlined_call_operand.hbm [shape: f32[128,128], index: 1, kind: input, shape index: {}]   ;;  %s1355_s2 = inlined_call_operand.hbm [shape: f32[1,128,128], index: 2, kind: input, shape index: {}]   ;;  %s1356_s3 = inlined_call_operand.hbm [shape: f32[2,128,128], index: 3, kind: input, shape index: {}]   ;;  %s1357_s4 = inlined_call_operand.vmem [shape: f32[2,128], index: 4, kind: input, shape index: {}]   ;;  %s1358_s5 = inlined_call_operand.hbm [shape: f32[128,128], index: 5, kind: input, shape index: {}]   ;;  %s1359_s6 = inlined_call_operand.vmem [shape: f32[1,128], index: 6, kind: input, shape index: {}]   ;;  %s1360_s7 = inlined_call_operand.hbm [shape: f32[8,128], index: 7, kind: output, shape index: {}]  }
   0x1   :  { %13 = vsyncpa [#allocation7], 0 }
   0x2   :  { %14 = vsyncpa [#allocation10], 0 }
   0x3   :  { %15 = vsyncpa [#allocation5], 0  ;;  %s33_s26 = sshll.u32 %s1354_s1, 4  ;;  %s927_s27 = smov [#allocation6]   ;;  %s34_s26 = int_to_ptr.hbm [resolvable:$true] %s33_s26 }
   0x4   :  { %s35_s28 = sshll.u32 %s927_s27, 4  ;;  %s59_s8 = sshll.u32 %s1356_s3, 4  ;;  %s36_s28 = int_to_ptr.vmem [resolvable:$true] %s35_s28  ;;  %s60_s8 = int_to_ptr.hbm [resolvable:$true] %s59_s8 }
   0x5   :  { %s928_s9 = smov 128   ;;  %s929_s10 = smov 8  }
   0x6   :  { %41 = dma.hbm_to_vmem [thread:$0]  %s34_s26, 2048, %s36_s28, [#allocation7], %s928_s9, %s928_s9, %s929_s10  }
   0x7   :  { %s930_s11 = smov [#allocation9]   ;;  %s20_s15 = sshll.u32 %s1353_s0, 4  ;;  %s21_s15 = int_to_ptr.hbm [resolvable:$true] %s20_s15 }
   0x8   :  { %s61_s12 = sshll.u32 %s930_s11, 4  ;;  %s46_s17 = sshll.u32 %s1355_s2, 4  ;;  %s62_s12 = int_to_ptr.vmem [resolvable:$true] %s61_s12  ;;  %s47_s17 = int_to_ptr.hbm [resolvable:$true] %s46_s17 }
   0x9   :  { %67 = dma.hbm_to_vmem [thread:$0]  %s60_s8, 4096, %s62_s12, [#allocation10], %s928_s9, %s928_s9, %s929_s10  }
   0xa   :  { %s931_s18 = smov [#allocation3]   ;;  %s932_s3 = smov [#allocation8]  }
   0xb   :  { %s22_s19 = sshll.u32 %s931_s18, 4  ;;  %s48_s20 = sshll.u32 %s932_s3, 4  ;;  %s23_s19 = int_to_ptr.vmem [resolvable:$true] %s22_s19  ;;  %s49_s20 = int_to_ptr.vmem [resolvable:$true] %s48_s20 }
   0xc   :  { %28 = dma.hbm_to_vmem [thread:$0]  %s21_s15, 1024, %s23_s19, [#allocation4], %s928_s9, %s928_s9, %s929_s10  }
   0xd   :  { %s74_s23 = sshll.u32 %s1358_s5, 4  ;;  %s933_s0 = smov [#allocation11]   ;;  %s75_s23 = int_to_ptr.hbm [resolvable:$true] %s74_s23 }
   0xe   :  { %54 = dma.hbm_to_vmem [thread:$0]  %s47_s17, 2048, %s49_s20, [#allocation7], %s928_s9, %s928_s9, %s929_s10  }
   0xf   :  { %s76_s24 = sshll.u32 %s933_s0, 4  ;;  %s77_s24 = int_to_ptr.vmem [resolvable:$true] %s76_s24 }
  0x10   :  { %82 = dma.hbm_to_vmem [thread:$0]  %s75_s23, 2048, %s77_s24, [#allocation10], %s928_s9, %s928_s9, %s929_s10  }
  0x11   :  { %919 = dma.done.wait [#allocation4], 1024  }
  0x12   :  { %920 = vsyncadd [#allocation4], 4294966272 }
  0x13   :  { %921 = dma.done.wait [#allocation7], 4096  }
  0x14   :  { %922 = vsyncadd [#allocation7], 4294963200 }
  0x15   :  { %923 = dma.done.wait [#allocation10], 6144  }
  0x16   :  { %924 = vsyncadd [#allocation10], 4294961152  ;;  %v128_v0 = vld [vmem:[#allocation6 + $0x78] sm:$0xff]  ;;  %v127_v1 = vld [vmem:[#allocation6 + $0x70] sm:$0xff]  ;;  %v934_v33 = vmov 0.0   ;;  %s935_s28 = smov [#allocation12]  }
  0x17   :  { %v991_v2 = vld [vmem:[#allocation9 + $0x78] sm:$0xff]  ;;  %131 = vmatpush.msra.mxu0 %v128_v0  ;;  %v994_v3 = vld [vmem:[#allocation9 + $0x70] sm:$0xff]  ;;  %v126_v4 = vld [vmem:[#allocation6 + $0x68] sm:$0xff]  ;;  %s717_s29 = sshll.u32 %s935_s28, 4  ;;  %s719_s9 = sshll.u32 %s1360_s7, 4  ;;  %s718_s29 = int_to_ptr.vmem [resolvable:$true] %s717_s29  ;;  %s720_s9 = int_to_ptr.hbm [resolvable:$true] %s719_s9 }
  0x18   :  { %197 = vmatpush.msra.mxu1 %v991_v2  ;;  %v996_v5 = vld [vmem:[#allocation9 + $0x68] sm:$0xff]  ;;  %222 = vmatpush.msra.mxu2 %v991_v2  ;;  %v125_v6 = vld [vmem:[#allocation6 + $0x60] sm:$0xff]  ;;  %v124_v8 = vld [vmem:[#allocation6 + $0x58] sm:$0xff] }
  0x19   :  { %247 = vmatpush.msra.mxu3 %v991_v2  ;;  %132 = vmatpush.msra.mxu0 %v127_v1  ;;  %v1001_v7 = vld [vmem:[#allocation9 + $0x60] sm:$0xff]  ;;  %v1006_v9 = vld [vmem:[#allocation9 + $0x58] sm:$0xff]  ;;  %v123_v10 = vld [vmem:[#allocation6 + $0x50] sm:$0xff] }
  0x1a   :  { %198 = vmatpush.msra.mxu1 %v994_v3  ;;  %223 = vmatpush.msra.mxu2 %v994_v3  ;;  %v1011_v11 = vld [vmem:[#allocation9 + $0x50] sm:$0xff]  ;;  %v122_v12 = vld [vmem:[#allocation6 + $0x48] sm:$0xff]  ;;  %v121_v14 = vld [vmem:[#allocation6 + $0x40] sm:$0xff] }
  0x1b   :  { %248 = vmatpush.msra.mxu3 %v994_v3  ;;  %133 = vmatpush.msra.mxu0 %v126_v4  ;;  %v1016_v13 = vld [vmem:[#allocation9 + $0x48] sm:$0xff]  ;;  %v1021_v15 = vld [vmem:[#allocation9 + $0x40] sm:$0xff]  ;;  %v120_v16 = vld [vmem:[#allocation6 + $0x38] sm:$0xff] }
  0x1c   :  { %199 = vmatpush.msra.mxu1 %v996_v5  ;;  %224 = vmatpush.msra.mxu2 %v996_v5  ;;  %v1026_v17 = vld [vmem:[#allocation9 + $0x38] sm:$0xff]  ;;  %v119_v18 = vld [vmem:[#allocation6 + $0x30] sm:$0xff]  ;;  %v118_v20 = vld [vmem:[#allocation6 + $0x28] sm:$0xff] }
  0x1d   :  { %249 = vmatpush.msra.mxu3 %v996_v5  ;;  %134 = vmatpush.msra.mxu0 %v125_v6  ;;  %v1031_v19 = vld [vmem:[#allocation9 + $0x30] sm:$0xff]  ;;  %v1036_v21 = vld [vmem:[#allocation9 + $0x28] sm:$0xff]  ;;  %v117_v22 = vld [vmem:[#allocation6 + $0x20] sm:$0xff] }
  0x1e   :  { %200 = vmatpush.msra.mxu1 %v1001_v7  ;;  %225 = vmatpush.msra.mxu2 %v1001_v7  ;;  %v1041_v23 = vld [vmem:[#allocation9 + $0x20] sm:$0xff]  ;;  %v116_v24 = vld [vmem:[#allocation6 + $0x18] sm:$0xff]  ;;  %v115_v26 = vld [vmem:[#allocation6 + $0x10] sm:$0xff] }
  0x1f   :  { %250 = vmatpush.msra.mxu3 %v1001_v7  ;;  %135 = vmatpush.msra.mxu0 %v124_v8  ;;  %v1046_v25 = vld [vmem:[#allocation9 + $0x18] sm:$0xff]  ;;  %v1051_v27 = vld [vmem:[#allocation9 + $0x10] sm:$0xff]  ;;  %v114_v28 = vld [vmem:[#allocation6 + $0x8] sm:$0xff] }
  0x20   :  { %201 = vmatpush.msra.mxu1 %v1006_v9  ;;  %226 = vmatpush.msra.mxu2 %v1006_v9  ;;  %v1056_v29 = vld [vmem:[#allocation9 + $0x8] sm:$0xff]  ;;  %v113_v30 = vld [vmem:[#allocation6] sm:$0xff]  ;;  %v107_v41 = vld [vmem:[#allocation3 + $0x10] sm:$0xff] }
  0x21   :  { %251 = vmatpush.msra.mxu3 %v1006_v9  ;;  %136 = vmatpush.msra.mxu0 %v123_v10  ;;  %v1061_v31 = vld [vmem:[#allocation9] sm:$0xff]  ;;  %v106_v34 = vld [vmem:[#allocation3 + $0x8] sm:$0xff]  ;;  %v108_v47 = vld [vmem:[#allocation3 + $0x18] sm:$0xff] }
  0x22   :  { %202 = vmatpush.msra.mxu1 %v1011_v11  ;;  %227 = vmatpush.msra.mxu2 %v1011_v11  ;;  %v105_v32 = vld [vmem:[#allocation3] sm:$0xff]  ;;  %v418_v48 = vld [vmem:[#allocation8 + $0x78] sm:$0xff]  ;;  %v417_v49 = vld [vmem:[#allocation8 + $0x70] sm:$0xff] }
  0x23   :  { %252 = vmatpush.msra.mxu3 %v1011_v11  ;;  %137 = vmatpush.msra.mxu0 %v122_v12  ;;  %v1155_v35 = vld [vmem:[%s1357_s4] ss:$0 sm:$0xff]  ;;  %v416_v50 = vld [vmem:[#allocation8 + $0x68] sm:$0xff]  ;;  %v414_v52 = vld [vmem:[#allocation8 + $0x58] sm:$0xff] }
  0x24   :  { %203 = vmatpush.msra.mxu1 %v1016_v13  ;;  %228 = vmatpush.msra.mxu2 %v1016_v13  ;;  %v415_v51 = vld [vmem:[#allocation8 + $0x60] sm:$0xff]  ;;  %v413_v53 = vld [vmem:[#allocation8 + $0x50] sm:$0xff]  ;;  %v412_v59 = vld [vmem:[#allocation8 + $0x48] sm:$0xff] }
  0x25   :  { %253 = vmatpush.msra.mxu3 %v1016_v13  ;;  %138 = vmatpush.msra.mxu0 %v121_v14  ;;  %v411_v60 = vld [vmem:[#allocation8 + $0x40] sm:$0xff]  ;;  %v410_v61 = vld [vmem:[#allocation8 + $0x38] sm:$0xff]  ;;  %v409_v62 = vld [vmem:[#allocation8 + $0x30] sm:$0xff] }
  0x26   :  { %204 = vmatpush.msra.mxu1 %v1021_v15  ;;  %229 = vmatpush.msra.mxu2 %v1021_v15  ;;  %v408_v63 = vld [vmem:[#allocation8 + $0x28] sm:$0xff]  ;;  %v407_v0 = vld [vmem:[#allocation8 + $0x20] sm:$0xff]  ;;  %v406_v1 = vld [vmem:[#allocation8 + $0x18] sm:$0xff] }
  0x27   :  { %254 = vmatpush.msra.mxu3 %v1021_v15  ;;  %139 = vmatpush.msra.mxu0 %v120_v16  ;;  %v404_v4 = vld [vmem:[#allocation8 + $0x8] sm:$0xff]  ;;  %v1169_v12 = vld [vmem:[#allocation9 + $0xf0] sm:$0xff]  ;;  %v1179_v14 = vld [vmem:[#allocation9 + $0xe0] sm:$0xff] }
  0x28   :  { %205 = vmatpush.msra.mxu1 %v1026_v17  ;;  %230 = vmatpush.msra.mxu2 %v1026_v17  ;;  %v1192_v16 = vld [vmem:[#allocation9 + $0xd0] sm:$0xff] }
  0x29   :  { %255 = vmatpush.msra.mxu3 %v1026_v17  ;;  %140 = vmatpush.msra.mxu0 %v119_v18  ;;  %v1211_v18 = vld [vmem:[#allocation9 + $0xc0] sm:$0xff] }
  0x2a   :  { %206 = vmatpush.msra.mxu1 %v1031_v19  ;;  %231 = vmatpush.msra.mxu2 %v1031_v19 }
  0x2b   :  { %256 = vmatpush.msra.mxu3 %v1031_v19  ;;  %141 = vmatpush.msra.mxu0 %v118_v20  ;;  %v1220_v20 = vld [vmem:[#allocation9 + $0xb0] sm:$0xff] }
  0x2c   :  { %207 = vmatpush.msra.mxu1 %v1036_v21  ;;  %232 = vmatpush.msra.mxu2 %v1036_v21 }
  0x2d   :  { %257 = vmatpush.msra.mxu3 %v1036_v21  ;;  %142 = vmatpush.msra.mxu0 %v117_v22  ;;  %v1233_v22 = vld [vmem:[#allocation9 + $0xa0] sm:$0xff] }
  0x2e   :  { %208 = vmatpush.msra.mxu1 %v1041_v23  ;;  %233 = vmatpush.msra.mxu2 %v1041_v23 }
  0x2f   :  { %258 = vmatpush.msra.mxu3 %v1041_v23  ;;  %143 = vmatpush.msra.mxu0 %v116_v24  ;;  %v1241_v24 = vld [vmem:[#allocation9 + $0x90] sm:$0xff] }
  0x30   :  { %209 = vmatpush.msra.mxu1 %v1046_v25  ;;  %234 = vmatpush.msra.mxu2 %v1046_v25 }
  0x31   :  { %259 = vmatpush.msra.mxu3 %v1046_v25  ;;  %144 = vmatpush.msra.mxu0 %v115_v26  ;;  %v1246_v26 = vld [vmem:[#allocation9 + $0x88] sm:$0xff] }
  0x32   :  { %210 = vmatpush.msra.mxu1 %v1051_v27  ;;  %235 = vmatpush.msra.mxu2 %v1051_v27 }
  0x33   :  { %260 = vmatpush.msra.mxu3 %v1051_v27  ;;  %145 = vmatpush.msra.mxu0 %v114_v28 }
  0x34   :  { %211 = vmatpush.msra.mxu1 %v1056_v29  ;;  %236 = vmatpush.msra.mxu2 %v1056_v29 }
  0x35   :  { %261 = vmatpush.msra.mxu3 %v1056_v29  ;;  %146 = vmatpush.msra.mxu0 %v113_v30 }
  0x36   :  { %212 = vmatpush.msra.mxu1 %v1061_v31  ;;  %147 = vmatmul.f32.vlgmr.msra.gmra.mxu0 %v105_v32  ;;  %v111_v32 = vld [vmem:[#allocation3 + $0x30] sm:$0xff] }
  0x37   :  { %213 = vmatmul.f32.vlgmr.msra.gmra.mxu1 %v934_v33  ;;  %237 = vmatpush.msra.mxu2 %v1061_v31 }
  0x38   :  { %262 = vmatpush.msra.mxu3 %v1061_v31  ;;  %272 = vmatpush.msrb.mxu1 %v991_v2 }
  0x39   :  { %297 = vmatpush.msrb.mxu2 %v991_v2  ;;  %347 = vmatpush.msrb.mxu0 %v991_v2 }
  0x3a   :  { %322 = vmatpush.msrb.mxu3 %v991_v2  ;;  %273 = vmatpush.msrb.mxu1 %v994_v3 }
  0x3b   :  { %298 = vmatpush.msrb.mxu2 %v994_v3  ;;  %348 = vmatpush.msrb.mxu0 %v994_v3 }
  0x3c   :  { %323 = vmatpush.msrb.mxu3 %v994_v3  ;;  %274 = vmatpush.msrb.mxu1 %v996_v5 }
  0x3d   :  { %299 = vmatpush.msrb.mxu2 %v996_v5  ;;  %349 = vmatpush.msrb.mxu0 %v996_v5 }
  0x3e   :  { %324 = vmatpush.msrb.mxu3 %v996_v5  ;;  %275 = vmatpush.msrb.mxu1 %v1001_v7 }
  0x3f   :  { %300 = vmatpush.msrb.mxu2 %v1001_v7  ;;  %350 = vmatpush.msrb.mxu0 %v1001_v7 }
  0x40   :  { %325 = vmatpush.msrb.mxu3 %v1001_v7  ;;  %276 = vmatpush.msrb.mxu1 %v1006_v9 }
  0x41   :  { %301 = vmatpush.msrb.mxu2 %v1006_v9  ;;  %351 = vmatpush.msrb.mxu0 %v1006_v9 }
  0x42   :  { %326 = vmatpush.msrb.mxu3 %v1006_v9  ;;  %277 = vmatpush.msrb.mxu1 %v1011_v11 }
  0x43   :  { %302 = vmatpush.msrb.mxu2 %v1011_v11  ;;  %352 = vmatpush.msrb.mxu0 %v1011_v11 }
  0x44   :  { %327 = vmatpush.msrb.mxu3 %v1011_v11  ;;  %278 = vmatpush.msrb.mxu1 %v1016_v13 }
  0x45   :  { %303 = vmatpush.msrb.mxu2 %v1016_v13  ;;  %353 = vmatpush.msrb.mxu0 %v1016_v13 }
  0x46   :  { %328 = vmatpush.msrb.mxu3 %v1016_v13  ;;  %279 = vmatpush.msrb.mxu1 %v1021_v15 }
  0x47   :  { %304 = vmatpush.msrb.mxu2 %v1021_v15  ;;  %354 = vmatpush.msrb.mxu0 %v1021_v15 }
  0x48   :  { %329 = vmatpush.msrb.mxu3 %v1021_v15  ;;  %280 = vmatpush.msrb.mxu1 %v1026_v17 }
  0x49   :  { %305 = vmatpush.msrb.mxu2 %v1026_v17  ;;  %355 = vmatpush.msrb.mxu0 %v1026_v17 }
  0x4a   :  { %330 = vmatpush.msrb.mxu3 %v1026_v17  ;;  %281 = vmatpush.msrb.mxu1 %v1031_v19 }
  0x4b   :  { %306 = vmatpush.msrb.mxu2 %v1031_v19  ;;  %356 = vmatpush.msrb.mxu0 %v1031_v19 }
  0x4c   :  { %331 = vmatpush.msrb.mxu3 %v1031_v19  ;;  %282 = vmatpush.msrb.mxu1 %v1036_v21 }
  0x4d   :  { %307 = vmatpush.msrb.mxu2 %v1036_v21  ;;  %357 = vmatpush.msrb.mxu0 %v1036_v21 }
  0x4e   :  { %332 = vmatpush.msrb.mxu3 %v1036_v21  ;;  %283 = vmatpush.msrb.mxu1 %v1041_v23 }
  0x4f   :  { %308 = vmatpush.msrb.mxu2 %v1041_v23  ;;  %358 = vmatpush.msrb.mxu0 %v1041_v23 }
  0x50   :  { %333 = vmatpush.msrb.mxu3 %v1041_v23  ;;  %284 = vmatpush.msrb.mxu1 %v1046_v25 }
  0x51   :  { %309 = vmatpush.msrb.mxu2 %v1046_v25  ;;  %359 = vmatpush.msrb.mxu0 %v1046_v25 }
  0x52   :  { %334 = vmatpush.msrb.mxu3 %v1046_v25  ;;  %285 = vmatpush.msrb.mxu1 %v1051_v27 }
  0x53   :  { %310 = vmatpush.msrb.mxu2 %v1051_v27  ;;  %360 = vmatpush.msrb.mxu0 %v1051_v27 }
  0x54   :  { %335 = vmatpush.msrb.mxu3 %v1051_v27  ;;  %286 = vmatpush.msrb.mxu1 %v1056_v29 }
  0x55   :  { %311 = vmatpush.msrb.mxu2 %v1056_v29  ;;  %361 = vmatpush.msrb.mxu0 %v1056_v29 }
  0x56   :  { %336 = vmatpush.msrb.mxu3 %v1056_v29  ;;  %287 = vmatpush.msrb.mxu1 %v1061_v31 }
  0x57   :  { %312 = vmatpush.msrb.mxu2 %v1061_v31  ;;  %362 = vmatpush.msrb.mxu0 %v1061_v31 }
  0x58   :  { %337 = vmatpush.msrb.mxu3 %v1061_v31  ;;  %372 = vmatpush.msra.mxu1 %v991_v2  ;;  %v405_v2 = vld [vmem:[#allocation8 + $0x10] sm:$0xff] }
  0x59   :  { %150 = vmatmul.f32.gmra.mxu0 %v106_v34 }
  0x5a   :  { %373 = vmatpush.msra.mxu1 %v994_v3  ;;  %v109_v3 = vld [vmem:[#allocation3 + $0x20] sm:$0xff] }
  0x5c   :  { %374 = vmatpush.msra.mxu1 %v996_v5  ;;  %v403_v5 = vld [vmem:[#allocation8] sm:$0xff] }
  0x5e   :  { %375 = vmatpush.msra.mxu1 %v1001_v7 }
  0x60   :  { %376 = vmatpush.msra.mxu1 %v1006_v9 }
  0x61   :  { %153 = vmatmul.f32.gmra.mxu0 %v107_v41 }
  0x62   :  { %377 = vmatpush.msra.mxu1 %v1011_v11  ;;  %v1167_v11 = vld [vmem:[#allocation9 + $0xf8] sm:$0xff] }
  0x63   :  { %511 = vmatpush.msra.mxu0 %v1167_v11 }
  0x64   :  { %378 = vmatpush.msra.mxu1 %v1016_v13  ;;  %v1173_v13 = vld [vmem:[#allocation9 + $0xe8] sm:$0xff] }
  0x65   :  { %512 = vmatpush.msra.mxu0 %v1169_v12 }
  0x66   :  { %379 = vmatpush.msra.mxu1 %v1021_v15  ;;  %v1185_v15 = vld [vmem:[#allocation9 + $0xd8] sm:$0xff] }
  0x67   :  { %513 = vmatpush.msra.mxu0 %v1173_v13 }
  0x68   :  { %380 = vmatpush.msra.mxu1 %v1026_v17  ;;  %v1205_v17 = vld [vmem:[#allocation9 + $0xc8] sm:$0xff] }
  0x69   :  { %156 = vmatmul.f32.gmra.mxu0 %v108_v47 }
  0x6a   :  { %381 = vmatpush.msra.mxu1 %v1031_v19  ;;  %514 = vmatpush.msra.mxu0 %v1179_v14  ;;  %v1215_v19 = vld [vmem:[#allocation9 + $0xb8] sm:$0xff] }
  0x6c   :  { %382 = vmatpush.msra.mxu1 %v1036_v21  ;;  %515 = vmatpush.msra.mxu0 %v1185_v15  ;;  %v1223_v21 = vld [vmem:[#allocation9 + $0xa8] sm:$0xff] }
  0x6e   :  { %383 = vmatpush.msra.mxu1 %v1041_v23  ;;  %516 = vmatpush.msra.mxu0 %v1192_v16  ;;  %v1239_v23 = vld [vmem:[#allocation9 + $0x98] sm:$0xff] }
  0x70   :  { %384 = vmatpush.msra.mxu1 %v1046_v25  ;;  %517 = vmatpush.msra.mxu0 %v1205_v17  ;;  %v110_v25 = vld [vmem:[#allocation3 + $0x28] sm:$0xff] }
  0x71   :  { %159 = vmatmul.f32.gmra.mxu0 %v109_v3 }
  0x72   :  { %385 = vmatpush.msra.mxu1 %v1051_v27  ;;  %518 = vmatpush.msra.mxu0 %v1211_v18  ;;  %v1256_v27 = vld [vmem:[#allocation9 + $0x80] sm:$0xff] }
  0x74   :  { %386 = vmatpush.msra.mxu1 %v1056_v29  ;;  %519 = vmatpush.msra.mxu0 %v1215_v19 }
  0x76   :  { %387 = vmatpush.msra.mxu1 %v1061_v31  ;;  %520 = vmatpush.msra.mxu0 %v1220_v20 }
  0x78   :  { %521 = vmatpush.msra.mxu0 %v1223_v21 }
  0x79   :  { %162 = vmatmul.f32.gmra.mxu0 %v110_v25  ;;  %v679_v25 = vld [vmem:[#allocation11 + $0x40] sm:$0xff] }
  0x7a   :  { %522 = vmatpush.msra.mxu0 %v1233_v22 }
  0x7c   :  { %523 = vmatpush.msra.mxu0 %v1239_v23 }
  0x7e   :  { %524 = vmatpush.msra.mxu0 %v1241_v24 }
  0x80   :  { %525 = vmatpush.msra.mxu0 %v1246_v26 }
  0x81   :  { %165 = vmatmul.f32.gmra.mxu0 %v111_v32 }
  0x82   :  { %526 = vmatpush.msra.mxu0 %v1256_v27 }
  0xb3   :  { %v148_v36 = vpop.f32.mrf.mxu0 }
  0xb4   :  { %v214_v37 = vpop.f32.mrf.mxu1  ;;  %v149_v38 = vadd.f32 %v1155_v35, %v148_v36 }
  0xb6   :  { %v217_v39 = vadd.f32 %v214_v37, %v149_v38 }
  0xb8   :  { %743 = vtanh.f32 %v217_v39 }
  0xbe   :  { %v1158_v40 = vpop.eup %743 }
  0xbf   :  { %238 = vmatmul.f32.vlgmr.msra.gmra.mxu2 %v1158_v40 }
  0xc0   :  { %421 = vmatpush.msra.mxu2 %v418_v48 }
  0xc2   :  { %422 = vmatpush.msra.mxu2 %v417_v49 }
  0xc4   :  { %423 = vmatpush.msra.mxu2 %v416_v50 }
  0xc6   :  { %424 = vmatpush.msra.mxu2 %v415_v51 }
  0xc8   :  { %425 = vmatpush.msra.mxu2 %v414_v52 }
  0xca   :  { %426 = vmatpush.msra.mxu2 %v413_v53 }
  0xcc   :  { %427 = vmatpush.msra.mxu2 %v412_v59 }
  0xce   :  { %428 = vmatpush.msra.mxu2 %v411_v60 }
  0xd0   :  { %429 = vmatpush.msra.mxu2 %v410_v61 }
  0xd2   :  { %430 = vmatpush.msra.mxu2 %v409_v62 }
  0xd4   :  { %431 = vmatpush.msra.mxu2 %v408_v63 }
  0xd6   :  { %v151_v42 = vpop.f32.mrf.mxu0  ;;  %432 = vmatpush.msra.mxu2 %v407_v0 }
  0xd7   :  { %v152_v43 = vadd.f32 %v1155_v35, %v151_v42 }
  0xd8   :  { %433 = vmatpush.msra.mxu2 %v406_v1 }
  0xda   :  { %434 = vmatpush.msra.mxu2 %v405_v2 }
  0xdc   :  { %435 = vmatpush.msra.mxu2 %v404_v4 }
  0xde   :  { %v154_v54 = vpop.f32.mrf.mxu0  ;;  %436 = vmatpush.msra.mxu2 %v403_v5 }
  0xdf   :  { %v155_v55 = vadd.f32 %v1155_v35, %v154_v54 }
  0xe6   :  { %v157_v6 = vpop.f32.mrf.mxu0 }
  0xe7   :  { %v158_v7 = vadd.f32 %v1155_v35, %v157_v6 }
  0xee   :  { %v160_v28 = vpop.f32.mrf.mxu0 }
  0xef   :  { %v161_v29 = vadd.f32 %v1155_v35, %v160_v28  ;;  %v677_v28 = vld [vmem:[#allocation11 + $0x30] sm:$0xff] }
  0xf6   :  { %v163_v36 = vpop.f32.mrf.mxu0 }
  0xf7   :  { %v164_v37 = vadd.f32 %v1155_v35, %v163_v36  ;;  %v674_v36 = vld [vmem:[#allocation11 + $0x18] sm:$0xff] }
  0xfe   :  { %v166_v47 = vpop.f32.mrf.mxu0 }
  0xff   :  { %v167_v49 = vadd.f32 %v1155_v35, %v166_v47 }
 0x142   :  { %v239_v44 = vpop.f32.mrf.mxu2 }
 0x143   :  { %v242_v45 = vadd.f32 %v239_v44, %v152_v43 }
 0x145   :  { %745 = vtanh.f32 %v242_v45 }
 0x14b   :  { %v1162_v46 = vpop.eup %745 }
 0x14c   :  { %263 = vmatmul.f32.vlgmr.msra.gmra.mxu3 %v1162_v46 }
 0x14d   :  { %488 = vmatpush.msra.mxu3 %v1167_v11 }
 0x14f   :  { %489 = vmatpush.msra.mxu3 %v1169_v12 }
 0x151   :  { %490 = vmatpush.msra.mxu3 %v1173_v13 }
 0x153   :  { %491 = vmatpush.msra.mxu3 %v1179_v14 }
 0x155   :  { %492 = vmatpush.msra.mxu3 %v1185_v15 }
 0x157   :  { %493 = vmatpush.msra.mxu3 %v1192_v16 }
 0x159   :  { %494 = vmatpush.msra.mxu3 %v1205_v17 }
 0x15b   :  { %495 = vmatpush.msra.mxu3 %v1211_v18 }
 0x15d   :  { %496 = vmatpush.msra.mxu3 %v1215_v19 }
 0x15f   :  { %497 = vmatpush.msra.mxu3 %v1220_v20 }
 0x161   :  { %498 = vmatpush.msra.mxu3 %v1223_v21 }
 0x163   :  { %499 = vmatpush.msra.mxu3 %v1233_v22 }
 0x165   :  { %500 = vmatpush.msra.mxu3 %v1239_v23 }
 0x167   :  { %501 = vmatpush.msra.mxu3 %v1241_v24 }
 0x169   :  { %502 = vmatpush.msra.mxu3 %v1246_v26 }
 0x16b   :  { %503 = vmatpush.msra.mxu3 %v1256_v27 }
 0x1cf   :  { %v264_v56 = vpop.f32.mrf.mxu3 }
 0x1d0   :  { %v267_v57 = vadd.f32 %v264_v56, %v155_v55 }
 0x1d2   :  { %747 = vtanh.f32 %v267_v57 }
 0x1d8   :  { %v748_v58 = vpop.eup %747 }
 0x1d9   :  { %288 = vmatmul.f32.vlgmr.msrb.gmra.mxu1 %v748_v58 }
 0x1da   :  { %534 = vmatpush.msrb.mxu1 %v1167_v11 }
 0x1dc   :  { %535 = vmatpush.msrb.mxu1 %v1169_v12 }
 0x1de   :  { %536 = vmatpush.msrb.mxu1 %v1173_v13 }
 0x1e0   :  { %537 = vmatpush.msrb.mxu1 %v1179_v14 }
 0x1e2   :  { %538 = vmatpush.msrb.mxu1 %v1185_v15 }
 0x1e4   :  { %539 = vmatpush.msrb.mxu1 %v1192_v16 }
 0x1e6   :  { %540 = vmatpush.msrb.mxu1 %v1205_v17 }
 0x1e8   :  { %541 = vmatpush.msrb.mxu1 %v1211_v18 }
 0x1ea   :  { %542 = vmatpush.msrb.mxu1 %v1215_v19 }
 0x1ec   :  { %543 = vmatpush.msrb.mxu1 %v1220_v20 }
 0x1ee   :  { %544 = vmatpush.msrb.mxu1 %v1223_v21 }
 0x1f0   :  { %545 = vmatpush.msrb.mxu1 %v1233_v22 }
 0x1f2   :  { %546 = vmatpush.msrb.mxu1 %v1239_v23 }
 0x1f4   :  { %547 = vmatpush.msrb.mxu1 %v1241_v24 }
 0x1f6   :  { %548 = vmatpush.msrb.mxu1 %v1246_v26 }
 0x1f8   :  { %549 = vmatpush.msrb.mxu1 %v1256_v27 }
 0x256   :  { %v289_v8 = vpop.f32.mrf.mxu1 }
 0x257   :  { %v292_v9 = vadd.f32 %v289_v8, %v158_v7 }
 0x259   :  { %749 = vtanh.f32 %v292_v9 }
 0x25f   :  { %v750_v10 = vpop.eup %749 }
 0x260   :  { %313 = vmatmul.f32.vlgmr.msrb.gmra.mxu2 %v750_v10 }
 0x261   :  { %626 = vmatpush.msrb.mxu2 %v1167_v11 }
 0x263   :  { %627 = vmatpush.msrb.mxu2 %v1169_v12 }
 0x265   :  { %628 = vmatpush.msrb.mxu2 %v1173_v13 }
 0x267   :  { %629 = vmatpush.msrb.mxu2 %v1179_v14 }
 0x268   :  { %437 = vmatmul.f32.vlgmr.msra.gmra.mxu2 %v1158_v40  ;;  %v1303_v40 = vld [vmem:[%s1357_s4 + $0x1] ss:$0 sm:$0xff] }
 0x269   :  { %630 = vmatpush.msrb.mxu2 %v1185_v15 }
 0x26b   :  { %631 = vmatpush.msrb.mxu2 %v1192_v16 }
 0x26d   :  { %632 = vmatpush.msrb.mxu2 %v1205_v17 }
 0x26f   :  { %633 = vmatpush.msrb.mxu2 %v1211_v18 }
 0x270   :  { %440 = vmatmul.f32.gmra.mxu2 %v1162_v46 }
 0x271   :  { %634 = vmatpush.msrb.mxu2 %v1215_v19 }
 0x273   :  { %635 = vmatpush.msrb.mxu2 %v1220_v20 }
 0x275   :  { %636 = vmatpush.msrb.mxu2 %v1223_v21 }
 0x277   :  { %637 = vmatpush.msrb.mxu2 %v1233_v22 }
 0x278   :  { %443 = vmatmul.f32.gmra.mxu2 %v748_v58 }
 0x279   :  { %638 = vmatpush.msrb.mxu2 %v1239_v23 }
 0x27b   :  { %639 = vmatpush.msrb.mxu2 %v1241_v24 }
 0x27d   :  { %640 = vmatpush.msrb.mxu2 %v1246_v26 }
 0x27f   :  { %641 = vmatpush.msrb.mxu2 %v1256_v27 }
 0x280   :  { %446 = vmatmul.f32.gmra.mxu2 %v750_v10 }
 0x2e3   :  { %v314_v30 = vpop.f32.mrf.mxu2 }
 0x2e4   :  { %v317_v31 = vadd.f32 %v314_v30, %v161_v29  ;;  %v676_v29 = vld [vmem:[#allocation11 + $0x28] sm:$0xff] }
 0x2e6   :  { %751 = vtanh.f32 %v317_v31 }
 0x2eb   :  { %v438_v41 = vpop.f32.mrf.mxu2 }
 0x2ec   :  { %v752_v34 = vpop.eup %751  ;;  %v439_v42 = vadd.f32 %v1303_v40, %v438_v41 }
 0x2ed   :  { %338 = vmatmul.f32.vlgmr.msrb.gmra.mxu3 %v752_v34  ;;  %449 = vmatmul.f32.gmra.mxu2 %v752_v34 }
 0x2ee   :  { %557 = vmatpush.msrb.mxu3 %v1167_v11 }
 0x2f0   :  { %558 = vmatpush.msrb.mxu3 %v1169_v12 }
 0x2f2   :  { %559 = vmatpush.msrb.mxu3 %v1173_v13 }
 0x2f3   :  { %v441_v52 = vpop.f32.mrf.mxu2 }
 0x2f4   :  { %560 = vmatpush.msrb.mxu3 %v1179_v14  ;;  %v442_v53 = vadd.f32 %v1303_v40, %v441_v52 }
 0x2f5   :  { %504 = vmatmul.f32.vlgmr.msra.gmra.mxu3 %v934_v33  ;;  %v112_v33 = vld [vmem:[#allocation3 + $0x38] sm:$0xff] }
 0x2f6   :  { %561 = vmatpush.msrb.mxu3 %v1185_v15  ;;  %168 = vmatmul.f32.gmra.mxu0 %v112_v33  ;;  %v675_v33 = vld [vmem:[#allocation11 + $0x20] sm:$0xff] }
 0x2f8   :  { %562 = vmatpush.msrb.mxu3 %v1192_v16 }
 0x2fa   :  { %563 = vmatpush.msrb.mxu3 %v1205_v17 }
 0x2fb   :  { %v444_v61 = vpop.f32.mrf.mxu2 }
 0x2fc   :  { %564 = vmatpush.msrb.mxu3 %v1211_v18  ;;  %v445_v62 = vadd.f32 %v1303_v40, %v444_v61 }
 0x2fe   :  { %565 = vmatpush.msrb.mxu3 %v1215_v19 }
 0x300   :  { %566 = vmatpush.msrb.mxu3 %v1220_v20 }
 0x302   :  { %567 = vmatpush.msrb.mxu3 %v1223_v21 }
 0x303   :  { %v447_v3 = vpop.f32.mrf.mxu2 }
 0x304   :  { %568 = vmatpush.msrb.mxu3 %v1233_v22  ;;  %v448_v4 = vadd.f32 %v1303_v40, %v447_v3 }
 0x306   :  { %569 = vmatpush.msrb.mxu3 %v1239_v23 }
 0x308   :  { %570 = vmatpush.msrb.mxu3 %v1241_v24 }
 0x30a   :  { %571 = vmatpush.msrb.mxu3 %v1246_v26 }
 0x30c   :  { %572 = vmatpush.msrb.mxu3 %v1256_v27 }
 0x30e   :  { %649 = vmatpush.msra.mxu3 %v1167_v11 }
 0x310   :  { %650 = vmatpush.msra.mxu3 %v1169_v12 }
 0x312   :  { %651 = vmatpush.msra.mxu3 %v1173_v13 }
 0x314   :  { %652 = vmatpush.msra.mxu3 %v1179_v14 }
 0x316   :  { %653 = vmatpush.msra.mxu3 %v1185_v15 }
 0x318   :  { %654 = vmatpush.msra.mxu3 %v1192_v16 }
 0x31a   :  { %655 = vmatpush.msra.mxu3 %v1205_v17 }
 0x31c   :  { %656 = vmatpush.msra.mxu3 %v1211_v18 }
 0x31e   :  { %657 = vmatpush.msra.mxu3 %v1215_v19 }
 0x320   :  { %658 = vmatpush.msra.mxu3 %v1220_v20 }
 0x322   :  { %659 = vmatpush.msra.mxu3 %v1223_v21 }
 0x324   :  { %660 = vmatpush.msra.mxu3 %v1233_v22 }
 0x326   :  { %661 = vmatpush.msra.mxu3 %v1239_v23 }
 0x328   :  { %662 = vmatpush.msra.mxu3 %v1241_v24 }
 0x32a   :  { %663 = vmatpush.msra.mxu3 %v1246_v26 }
 0x32c   :  { %664 = vmatpush.msra.mxu3 %v1256_v27 }
 0x370   :  { %v339_v38 = vpop.f32.mrf.mxu3  ;;  %v450_v7 = vpop.f32.mrf.mxu2 }
 0x371   :  { %v342_v39 = vadd.f32 %v339_v38, %v164_v37  ;;  %v451_v8 = vadd.f32 %v1303_v40, %v450_v7  ;;  %v673_v37 = vld [vmem:[#allocation11 + $0x10] sm:$0xff]  ;;  %v672_v38 = vld [vmem:[#allocation11 + $0x8] sm:$0xff] }
 0x373   :  { %753 = vtanh.f32 %v342_v39  ;;  %v169_v48 = vpop.f32.mrf.mxu0  ;;  %v671_v39 = vld [vmem:[#allocation11] sm:$0xff] }
 0x374   :  { %v170_v58 = vadd.f32 %v1155_v35, %v169_v48 }
 0x378   :  { %v505_v43 = vpop.f32.mrf.mxu3 }
 0x379   :  { %v754_v44 = vpop.eup %753  ;;  %v508_v45 = vadd.f32 %v505_v43, %v439_v42 }
 0x37a   :  { %363 = vmatmul.f32.vlgmr.msrb.gmra.mxu0 %v754_v44  ;;  %452 = vmatmul.f32.gmra.mxu2 %v754_v44 }
 0x37b   :  { %755 = vtanh.f32 %v508_v45  ;;  %580 = vmatpush.msrb.mxu0 %v1167_v11  ;;  %v742_v45 = vld [vmem:[%s1359_s6] ss:$0 sm:$0xff] }
 0x37d   :  { %581 = vmatpush.msrb.mxu0 %v1169_v12 }
 0x37f   :  { %582 = vmatpush.msrb.mxu0 %v1173_v13 }
 0x381   :  { %v756_v46 = vpop.eup %755  ;;  %583 = vmatpush.msrb.mxu0 %v1179_v14 }
 0x382   :  { %527 = vmatmul.f32.vlgmr.msra.gmra.mxu0 %v756_v46 }
 0x383   :  { %584 = vmatpush.msrb.mxu0 %v1185_v15 }
 0x385   :  { %585 = vmatpush.msrb.mxu0 %v1192_v16 }
 0x387   :  { %586 = vmatpush.msrb.mxu0 %v1205_v17 }
 0x389   :  { %587 = vmatpush.msrb.mxu0 %v1211_v18 }
 0x38b   :  { %588 = vmatpush.msrb.mxu0 %v1215_v19 }
 0x38d   :  { %589 = vmatpush.msrb.mxu0 %v1220_v20 }
 0x38f   :  { %590 = vmatpush.msrb.mxu0 %v1223_v21 }
 0x391   :  { %591 = vmatpush.msrb.mxu0 %v1233_v22 }
 0x393   :  { %592 = vmatpush.msrb.mxu0 %v1239_v23 }
 0x395   :  { %593 = vmatpush.msrb.mxu0 %v1241_v24 }
 0x397   :  { %594 = vmatpush.msrb.mxu0 %v1246_v26 }
 0x399   :  { %595 = vmatpush.msrb.mxu0 %v1256_v27 }
 0x3f7   :  { %v364_v50 = vpop.f32.mrf.mxu0 }
 0x3f8   :  { %v367_v51 = vadd.f32 %v364_v50, %v167_v49 }
 0x3fa   :  { %757 = vtanh.f32 %v367_v51 }
 0x3ff   :  { %v528_v54 = vpop.f32.mrf.mxu0 }
 0x400   :  { %v758_v55 = vpop.eup %757  ;;  %v531_v56 = vadd.f32 %v528_v54, %v442_v53 }
 0x401   :  { %388 = vmatmul.f32.vlgmr.msra.gmra.mxu1 %v758_v55  ;;  %455 = vmatmul.f32.gmra.mxu2 %v758_v55 }
 0x402   :  { %759 = vtanh.f32 %v531_v56  ;;  %603 = vmatpush.msra.mxu1 %v1167_v11 }
 0x404   :  { %604 = vmatpush.msra.mxu1 %v1169_v12  ;;  %v453_v12 = vpop.f32.mrf.mxu2 }
 0x406   :  { %605 = vmatpush.msra.mxu1 %v1173_v13  ;;  %v454_v13 = vadd.f32 %v1303_v40, %v453_v12 }
 0x408   :  { %v760_v57 = vpop.eup %759  ;;  %606 = vmatpush.msra.mxu1 %v1179_v14 }
 0x409   :  { %550 = vmatmul.f32.vlgmr.msrb.gmra.mxu1 %v760_v57 }
 0x40a   :  { %607 = vmatpush.msra.mxu1 %v1185_v15 }
 0x40c   :  { %608 = vmatpush.msra.mxu1 %v1192_v16 }
 0x40e   :  { %609 = vmatpush.msra.mxu1 %v1205_v17  ;;  %v686_v17 = vld [vmem:[#allocation11 + $0x78] sm:$0xff] }
 0x40f   :  { %691 = vmatpush.msra.mxu0 %v686_v17 }
 0x410   :  { %610 = vmatpush.msra.mxu1 %v1211_v18  ;;  %v685_v18 = vld [vmem:[#allocation11 + $0x70] sm:$0xff] }
 0x411   :  { %692 = vmatpush.msra.mxu0 %v685_v18 }
 0x412   :  { %611 = vmatpush.msra.mxu1 %v1215_v19  ;;  %v684_v19 = vld [vmem:[#allocation11 + $0x68] sm:$0xff] }
 0x413   :  { %693 = vmatpush.msra.mxu0 %v684_v19 }
 0x414   :  { %612 = vmatpush.msra.mxu1 %v1220_v20  ;;  %v683_v20 = vld [vmem:[#allocation11 + $0x60] sm:$0xff] }
 0x415   :  { %694 = vmatpush.msra.mxu0 %v683_v20 }
 0x416   :  { %613 = vmatpush.msra.mxu1 %v1223_v21 }
 0x418   :  { %614 = vmatpush.msra.mxu1 %v1233_v22  ;;  %v682_v22 = vld [vmem:[#allocation11 + $0x58] sm:$0xff] }
 0x419   :  { %695 = vmatpush.msra.mxu0 %v682_v22 }
 0x41a   :  { %615 = vmatpush.msra.mxu1 %v1239_v23  ;;  %v681_v23 = vld [vmem:[#allocation11 + $0x50] sm:$0xff] }
 0x41b   :  { %696 = vmatpush.msra.mxu0 %v681_v23 }
 0x41c   :  { %616 = vmatpush.msra.mxu1 %v1241_v24  ;;  %v680_v24 = vld [vmem:[#allocation11 + $0x48] sm:$0xff] }
 0x41d   :  { %697 = vmatpush.msra.mxu0 %v680_v24 }
 0x41e   :  { %617 = vmatpush.msra.mxu1 %v1246_v26 }
 0x41f   :  { %698 = vmatpush.msra.mxu0 %v679_v25 }
 0x420   :  { %618 = vmatpush.msra.mxu1 %v1256_v27  ;;  %v678_v27 = vld [vmem:[#allocation11 + $0x38] sm:$0xff] }
 0x421   :  { %699 = vmatpush.msra.mxu0 %v678_v27 }
 0x423   :  { %700 = vmatpush.msra.mxu0 %v677_v28 }
 0x425   :  { %701 = vmatpush.msra.mxu0 %v676_v29 }
 0x427   :  { %702 = vmatpush.msra.mxu0 %v675_v33 }
 0x429   :  { %703 = vmatpush.msra.mxu0 %v674_v36 }
 0x42b   :  { %704 = vmatpush.msra.mxu0 %v673_v37 }
 0x42d   :  { %705 = vmatpush.msra.mxu0 %v672_v38 }
 0x42f   :  { %706 = vmatpush.msra.mxu0 %v671_v39 }
 0x47e   :  { %v389_v59 = vpop.f32.mrf.mxu1 }
 0x47f   :  { %v392_v60 = vadd.f32 %v389_v59, %v170_v58 }
 0x481   :  { %761 = vtanh.f32 %v392_v60 }
 0x484   :  { %v456_v21 = vpop.f32.mrf.mxu2 }
 0x485   :  { %v457_v30 = vadd.f32 %v1303_v40, %v456_v21 }
 0x486   :  { %v551_v63 = vpop.f32.mrf.mxu1 }
 0x487   :  { %v762_v0 = vpop.eup %761  ;;  %v554_v1 = vadd.f32 %v551_v63, %v445_v62 }
 0x488   :  { %458 = vmatmul.f32.gmra.mxu2 %v762_v0 }
 0x489   :  { %763 = vtanh.f32 %v554_v1 }
 0x48f   :  { %v764_v2 = vpop.eup %763 }
 0x490   :  { %573 = vmatmul.f32.vlgmr.msrb.gmra.mxu3 %v764_v2 }
 0x50b   :  { %v459_v26 = vpop.f32.mrf.mxu2 }
 0x50c   :  { %v460_v41 = vadd.f32 %v1303_v40, %v459_v26 }
 0x513   :  { %v574_v5 = vpop.f32.mrf.mxu3 }
 0x514   :  { %v577_v6 = vadd.f32 %v574_v5, %v448_v4 }
 0x516   :  { %765 = vtanh.f32 %v577_v6 }
 0x51c   :  { %v766_v35 = vpop.eup %765 }
 0x51d   :  { %596 = vmatmul.f32.vlgmr.msrb.gmra.mxu0 %v766_v35 }
 0x59a   :  { %v597_v9 = vpop.f32.mrf.mxu0 }
 0x59b   :  { %v600_v10 = vadd.f32 %v597_v9, %v451_v8 }
 0x59d   :  { %767 = vtanh.f32 %v600_v10 }
 0x5a3   :  { %v768_v11 = vpop.eup %767 }
 0x5a4   :  { %619 = vmatmul.f32.vlgmr.msra.gmra.mxu1 %v768_v11 }
 0x621   :  { %v620_v14 = vpop.f32.mrf.mxu1 }
 0x622   :  { %v623_v15 = vadd.f32 %v620_v14, %v454_v13 }
 0x624   :  { %769 = vtanh.f32 %v623_v15 }
 0x62a   :  { %v770_v16 = vpop.eup %769 }
 0x62b   :  { %642 = vmatmul.f32.vlgmr.msrb.gmra.mxu2 %v770_v16 }
 0x6ae   :  { %v643_v31 = vpop.f32.mrf.mxu2 }
 0x6af   :  { %v646_v32 = vadd.f32 %v643_v31, %v457_v30 }
 0x6b1   :  { %771 = vtanh.f32 %v646_v32 }
 0x6b7   :  { %v772_v34 = vpop.eup %771 }
 0x6b8   :  { %665 = vmatmul.f32.vlgmr.msra.gmra.mxu3 %v772_v34 }
 0x73b   :  { %v666_v42 = vpop.f32.mrf.mxu3 }
 0x73c   :  { %v669_v43 = vadd.f32 %v666_v42, %v460_v41 }
 0x73e   :  { %773 = vtanh.f32 %v669_v43 }
 0x744   :  { %v774_v44 = vpop.eup %773 }
 0x745   :  { %707 = vmatmul.f32.vlgmr.msra.gmra.mxu0 %v774_v44 }
 0x7c2   :  { %v708_v46 = vpop.f32.mrf.mxu0 }
 0x7c3   :  { %v709_v47 = vadd.f32 %v742_v45, %v708_v46 }
 0x7c5   :  { %711 = vst [vmem:[#allocation12] sm:$0xff] %v709_v47 }
 0x7c6   :  { %722 = dma.vmem_to_hbm [thread:$0]  %s718_s29, 128, %s720_s9, [#allocation5]  }
 0x7c7   :  { %925 = dma.done.wait [#allocation5], 128  }
 0x7c8   :  { %926 = vsyncadd [#allocation5], 4294967168 }
 0x7c9   :  { %727 = vsyncpa [#allocation4], 1 }
 0x7ca   :  { %728 = vsyncpa [#allocation7], 1 }
 0x7cb   :  { %729 = vsyncpa [#allocation10], 1 }
 0x7cc   :  { %730 = vsyncpa [#allocation5], 1 }

</bundles_post_ra>
